<compile_context>
chip_gen: v7x
topology: tpu7x:2x2x1
jax: 0.10.0
libtpu: 0.0.40
codegen_flags: <defaults>
</compile_context>

<pallas_src>
import jax
import jax.numpy as jnp
from jax.experimental import pallas as pl
from jax.experimental.pallas import tpu as pltpu


def _round_up(n, m):
    return ((n + m - 1) // m) * m


def _lr_kernel(x_ref, w_ref, b_ref, o_ref):
    # x_ref: (TB, D), w_ref: (C, D), b_ref: (C, 1), o_ref: (C, TB)
    logits = jax.lax.dot_general(
        w_ref[...], x_ref[...],
        dimension_numbers=(((1,), (1,)), ((), ())),   # contract D on both
        preferred_element_type=jnp.float32,
    ) + b_ref[...]
    o_ref[...] = jax.nn.sigmoid(logits).astype(o_ref.dtype)


def _vmem_capacity_bytes():
    try:
        return int(pltpu.get_tpu_info().vmem_capacity_bytes)
    except Exception:
        return 64 << 20  # conservative fallback (v7x per-TC VMEM)


def lr_forward(x, weight, bias, *, max_tile_rows=None, use_bf16_inputs=False):
    """Pallas implementation of LR.forward.

    x:      (B, D) float32
    weight: (C, D) float32   (torch nn.Linear convention)
    bias:   (C,)   float32
    returns sigmoid(x @ W.T + b).squeeze(1)  (drops axis 1 only if size 1)
    """
    B, D = x.shape
    C = weight.shape[0]

    in_dtype = jnp.bfloat16 if use_bf16_inputs else x.dtype
    x_in = x.astype(in_dtype)
    w_in = weight.astype(in_dtype)
    b_in = bias.reshape(C, 1).astype(jnp.float32)

    itemsize = jnp.dtype(in_dtype).itemsize
    lane_d = _round_up(max(D, 1), 128)     # lanes pad to 128 in VMEM
    c_pad = _round_up(C, 8)                # sublane padding for weight/out rows
    w_bytes = c_pad * lane_d * itemsize    # resident (untiled) weight footprint

    # --- generation-aware budgets ------------------------------------------
    vmem_cap = _vmem_capacity_bytes()
    small_vmem = vmem_cap < (96 << 20)     # v7x (64 MiB / TC) or unknown
    if small_vmem:
        x_tile_budget = 12 << 20           # per x buffer
        vmem_cap_limit = 48 << 20          # leave compiler headroom in 64 MiB
    else:
        x_tile_budget = 24 << 20
        vmem_cap_limit = 96 << 20          # v5e/v6e: 128 MiB physical

    # TODO(synk): very large C*D should tile the class/feature dims instead of
    # keeping the full weight resident; small-C logistic regression never hits this.
    budget_for_x = max(
        1 << 20, min(x_tile_budget, (vmem_cap_limit - w_bytes - (8 << 20)) // 4)
    )

    bytes_per_row = lane_d * itemsize
    tb_cap = max(128, ((budget_for_x // bytes_per_row) // 128) * 128)
    if small_vmem and B > 256:
        # ensure >=2 grid steps so the "parallel" axis shards over both v7x TCs
        tb_cap = min(tb_cap, max(128, _round_up(pl.cdiv(B, 2), 128)))
    if max_tile_rows is not None:
        tb_cap = min(tb_cap, max(128, (int(max_tile_rows) // 128) * 128))

    if B <= tb_cap:
        TB = B            # single full-extent block (always (8,128)-legal)
    else:
        TB = tb_cap       # multiple of 128; last grid block is ragged
    num_blocks = pl.cdiv(B, TB)

    # scoped VMEM: double-buffered x/out tiles + resident weight/bias + slack
    x_tile_bytes = _round_up(TB, 8) * lane_d * itemsize
    out_tile_bytes = c_pad * _round_up(TB, 128) * 4
    needed = 2 * x_tile_bytes + 2 * out_tile_bytes + w_bytes + c_pad * 128 * 4
    vmem_limit = int(min(max(needed + (4 << 20), 16 << 20), vmem_cap_limit))

    out = pl.pallas_call(
        _lr_kernel,
        out_shape=jax.ShapeDtypeStruct((C, B), jnp.float32),
        grid=(num_blocks,),
        in_specs=[
            pl.BlockSpec((TB, D), lambda i: (i, 0)),            # x: pipelined over batch
            pl.BlockSpec(memory_space=pltpu.MemorySpace.VMEM),  # weight: resident, 1 copy
            pl.BlockSpec(memory_space=pltpu.MemorySpace.VMEM),  # bias: resident, 1 copy
        ],
        out_specs=pl.BlockSpec((C, TB), lambda i: (0, i)),      # lane-dense output tile
        compiler_params=pltpu.CompilerParams(
            dimension_semantics=("parallel",),
            vmem_limit_bytes=vmem_limit,
        ),
    )(x_in, w_in, b_in)

    # Back to torch layout: (B, C) then .squeeze(1) (drop axis 1 only if size 1).
    if C == 1:
        return out[0]
    return out.T


def _reference(x, weight, bias):
    ref = jax.nn.sigmoid(x @ weight.T + bias)
    if ref.shape[1] == 1:
        ref = ref[:, 0]
    return ref


def _make_case(key, B, D, C):
    kx, kw, kb = jax.random.split(key, 3)
    x = jax.random.normal(kx, (B, D), dtype=jnp.float32)
    bound = 1.0 / (D ** 0.5)
    w = jax.random.uniform(kw, (C, D), jnp.float32, -bound, bound)
    b = jax.random.uniform(kb, (C,), jnp.float32, -bound, bound)
    return x, w, b


if __name__ == "__main__":
    key = jax.random.PRNGKey(0)
    keys = jax.random.split(key, 4)

    # (key, B, D, C, max_tile_rows)
    cases = [
        (keys[0], 8, 32, 1, None),     # module-consistent small shape, C==1
        (keys[1], 20, 64, 4, None),    # multi-class, non-multiple-of-8 batch
        (keys[2], 300, 32, 1, 128),    # multi-block grid with ragged tail
        (keys[3], 260, 128, 3, 128),   # multi-class + multi-block + ragged tail
    ]

    for k, B, D, C, mtr in cases:
        x, w, b = _make_case(k, B, D, C)
        out = jax.block_until_ready(lr_forward(x, w, b, max_tile_rows=mtr))
        ref = _reference(x, w, b)
        assert out.shape == ref.shape, (out.shape, ref.shape)
        assert jnp.allclose(out, ref, atol=1e-5, rtol=1e-5), (B, D, C)

    print("KERNEL_OK")
</pallas_src>

<mosaic_0001>
module attributes {stable_mosaic.version = 11 : i64} {
  func.func @_lr_kernel(%arg0: i32, %arg1: memref<8x32xf32, #tpu.memory_space<vmem>>, %arg2: memref<1x32xf32, #tpu.memory_space<vmem>>, %arg3: memref<1x1xf32, #tpu.memory_space<vmem>>, %arg4: memref<1x8xf32, #tpu.memory_space<vmem>>) attributes {dimension_semantics = [#tpu.dimension_semantics<parallel>], iteration_bounds = array<i64: 1>, scalar_prefetch = 0 : i64, scratch_operands = 0 : i64, tpu.core_type = #tpu.core_type<tc>, window_params = [{transform_indices = @transform_0, window_bounds = array<i64: 8, 32>}, {pipeline_mode = #tpu.pipeline_mode<synchronous>, transform_indices = @transform_1, window_bounds = array<i64: 1, 32>}, {pipeline_mode = #tpu.pipeline_mode<synchronous>, transform_indices = @transform_2, window_bounds = array<i64: 1, 1>}, {transform_indices = @transform_3, window_bounds = array<i64: 1, 8>}]} {
    %c0 = arith.constant 0 : index
    %c0_0 = arith.constant 0 : index
    %0 = vector.load %arg2[%c0, %c0_0] : memref<1x32xf32, #tpu.memory_space<vmem>>, vector<1x32xf32>
    %c0_1 = arith.constant 0 : index
    %c0_2 = arith.constant 0 : index
    %1 = vector.load %arg1[%c0_1, %c0_2] : memref<8x32xf32, #tpu.memory_space<vmem>>, vector<8x32xf32>
    %cst = arith.constant dense<0.000000e+00> : vector<1x8xf32>
    %2 = tpu.matmul %0, %1, %cst {dimension_numbers = #tpu.dot_dimension_numbers<[1], [1], [0], [0], [0, 0, 1, 0], [], []>} : vector<1x32xf32>, vector<8x32xf32>, vector<1x8xf32> -> vector<1x8xf32>
    %c0_3 = arith.constant 0 : index
    %c0_4 = arith.constant 0 : index
    %3 = vector.load %arg3[%c0_3, %c0_4] : memref<1x1xf32, #tpu.memory_space<vmem>>, vector<1x1xf32>
    %4 = vector.broadcast %3 : vector<1x1xf32> to vector<1x8xf32>
    %5 = arith.addf %2, %4 : vector<1x8xf32>
    %6 = arith.negf %5 : vector<1x8xf32>
    %7 = math.exp %6 : vector<1x8xf32>
    %cst_5 = arith.constant 1.000000e+00 : f32
    %8 = vector.broadcast %cst_5 : f32 to vector<1x8xf32>
    %9 = arith.addf %8, %7 : vector<1x8xf32>
    %10 = arith.divf %8, %9 : vector<1x8xf32>
    %c0_6 = arith.constant 0 : index
    %c0_7 = arith.constant 0 : index
    %11 = vector.load %arg4[%c0_6, %c0_7] : memref<1x8xf32, #tpu.memory_space<vmem>>, vector<1x8xf32>
    tpu.vector_store %arg4[%c0_6, %c0_7], %10 {strides = array<i32>} : memref<1x8xf32, #tpu.memory_space<vmem>>, vector<1x8xf32>,
    return
  }
  func.func @transform_0(%arg0: i32) -> (i32, i32) {
    %c0_i32 = arith.constant 0 : i32
    %c0_i32_0 = arith.constant 0 : i32
    return %arg0, %c0_i32 : i32, i32
  }
  func.func @transform_1(%arg0: i32) -> (i32, i32) {
    %c0_i32 = arith.constant 0 : i32
    %c0_i32_0 = arith.constant 0 : i32
    %c0_i32_1 = arith.constant 0 : i32
    return %c0_i32, %c0_i32_0 : i32, i32
  }
  func.func @transform_2(%arg0: i32) -> (i32, i32) {
    %c0_i32 = arith.constant 0 : i32
    %c0_i32_0 = arith.constant 0 : i32
    %c0_i32_1 = arith.constant 0 : i32
    return %c0_i32, %c0_i32_0 : i32, i32
  }
  func.func @transform_3(%arg0: i32) -> (i32, i32) {
    %c0_i32 = arith.constant 0 : i32
    %c0_i32_0 = arith.constant 0 : i32
    return %c0_i32, %arg0 : i32, i32
  }
}

</mosaic_0001>

<bundles_post_ra>
// kernel: tpu_custom_call.1
= control target key start
LH: loop header
LB: loop body
LE: loop exit
PB: predicated region body
PF: predicated region fallthrough
CT: control target
= control target key end

     0   :  { %s264_s0 = inlined_call_operand.hbm [shape: f32[8,32], index: 0, kind: input, shape index: {}]   ;;  %s265_s1 = inlined_call_operand.vmem [shape: f32[1,32], index: 1, kind: input, shape index: {}]   ;;  %s266_s2 = inlined_call_operand.<no memory space> [shape: f32[1,1], index: 2, kind: input, shape index: {}]   ;;  %s267_s3 = inlined_call_operand.hbm [shape: f32[1,8], index: 3, kind: output, shape index: {}]  }
   0x1   :  { %v8_v0 = vstv %s266_s2 }
   0x2   :  { %9 = vst [vmem:[#allocation2] sm:$0x1] %v8_v0 }
   0x3   :  { %10 = vsyncpa [#allocation4], 0 }
   0x4   :  { %11 = vsyncpa [#allocation5], 0  ;;  %s209_s14 = smov [#allocation3]   ;;  %s161_s18 = scalar_lea.hbm %s264_s0, 128 }
   0x5   :  { %s18_s15 = sshll.u32 %s209_s14, 4  ;;  %p162_p0 = scmp.ne.s32.totalorder %s264_s0, %s161_s18  ;;  %s19_s15 = int_to_ptr.vmem [resolvable:$true] %s18_s15 }
   0x6   :  { %p165_p1 = scmp.lt.u32.totalorder %s161_s18, %s264_s0 }
   0x8   :  { %p167_p2 = pnand %p165_p1, %p162_p0 }
   0xa   :  { %170 = shalt.err (!%p167_p2)
}
   0xb   :  { %s171_s2 = scalar_lea.vmem %s19_s15, 128  ;;  %p176_p4 = scmp.lt.s32.totalorder %s19_s15, %s19_s15 }
   0xc   :  { %p172_p3 = scmp.ne.s32.totalorder %s19_s15, %s171_s2  ;;  %p177_p5 = scmp.lt.s32.totalorder %s171_s2, %s171_s2 }
   0xe   :  { %p178_p6 = por %p177_p5, %p176_p4 }
  0x10   :  { %p179_p7 = pnand %p178_p6, %p172_p3 }
  0x12   :  { %182 = shalt.err (!%p179_p7)
}
  0x13   :  { %21 = dma.hbm_to_vmem [thread:$0]  %s264_s0, 128, %s19_s15, [#allocation4]  }
  0x14   :  { %205 = dma.done.wait [#allocation4], 128  }
  0x15   :  { %206 = vsyncadd [#allocation4], 4294967168  ;;  %v210_v1 = vmov 0.0   ;;  %vm211_vm0 = vmmov 0   ;;  %v212_v2 = vmov 0   ;;  %vm41_vm1 = vcmask 261120  }
  0x16   :  { %146 = vmatprep.subr.mxu0 %v210_v1  ;;  %148 = vmatprep.mubr.msk.f32.mxu0 %vm211_vm0, %v210_v1  ;;  %v30_v3 = vld [vmem:[#allocation3] sm:$0xff]  ;;  %v31_v4 = vld [vmem:[#allocation2] sm:$0x1]  ;;  %v37_v6 = vlaneseq  ;;  %s213_s0 = smov [#allocation6]   ;;  %vm124_vm2 = vcmask 57344  }
  0x17   :  { %156 = vset.pattern.permute.xlu0 %v212_v2  ;;  %147 = vmatpush3.xpose.msk.msra.mxu0 %vm41_vm1, %v30_v3  ;;  %v29_v5 = vld [vmem:[%s265_s1] sm:$0x1]  ;;  %s132_s27 = sshll.u32 %s213_s0, 4  ;;  %s133_s27 = int_to_ptr.vmem [resolvable:$true] %s132_s27 }
  0x18   :  { %34 = vperm.xlu0 %156, %v31_v4   ;;  %v38_v7 = vshrl.u32 %v37_v6, 7  ;;  %s183_s1 = scalar_lea.vmem %s133_s27, 16  ;;  %s187_s28 = scalar_lea.vmem %s133_s27, 32 }
  0x19   :  { %p184_p8 = scmp.ne.s32.totalorder %s133_s27, %s183_s1  ;;  %p188_p9 = scmp.lt.s32.totalorder %s133_s27, %s133_s27 }
  0x1a   :  { %149 = vmatmul.mubr.msk.f32.vlgmr.msra.gmra.mrb[0].mxu0 %vm41_vm1, %v29_v5  ;;  %v39_v8 = vsub.s32 0, %v38_v7  ;;  %p189_p10 = scmp.lt.s32.totalorder %s187_s28, %s183_s1 }
  0x1c   :  { %p190_p11 = por %p189_p10, %p188_p9 }
  0x1e   :  { %p191_p12 = pnand %p190_p11, %p184_p8 }
  0x97   :  { %v35_v9 = vpop.permute.xlu0 %34 }
  0x98   :  { %v40_v10 = vrot.slane %v35_v9, %v39_v8 }
  0xed   :  { %v114_v11 = vpop.f32.mrb[0].mxu0 }
  0xee   :  { %v115_v12 = vadd.f32 %v114_v11, %v40_v10  ;;  %v150_v13 = vpop.f32.mrb[1].mxu0 }
  0xf0   :  { %v143_v14 = vmul.f32 -1.442695, %v115_v12 }
  0xf2   :  { %157 = vpow2.f32 %v143_v14 }
  0xfc   :  { %v158_v15 = vpop.eup %157 }
  0xfd   :  { %v121_v16 = vadd.f32 1.0, %v158_v15 }
  0xff   :  { %159 = vrcp.f32 %v121_v16 }
 0x109   :  { %v160_v17 = vpop.eup %159 }
 0x10a   :  { %125 = vst.msk [vmem:[#allocation6] sm:$0x1] %vm124_vm2, %v160_v17 }
 0x10b   :  { %194 = shalt.err (!%p191_p12)
}
 0x10c   :  { %s195_s4 = scalar_lea.hbm %s267_s3, 16 }
 0x10d   :  { %p196_p13 = scmp.ne.s32.totalorder %s267_s3, %s195_s4  ;;  %p199_p0 = scmp.lt.u32.totalorder %s195_s4, %s267_s3 }
 0x10f   :  { %p201_p1 = pnand %p199_p0, %p196_p13 }
 0x111   :  { %204 = shalt.err (!%p201_p1)
}
 0x112   :  { %135 = dma.vmem_to_hbm [thread:$0]  %s133_s27, 16, %s267_s3, [#allocation5]  }
 0x113   :  { %207 = dma.done.wait [#allocation5], 16  }
 0x114   :  { %208 = vsyncadd [#allocation5], 4294967280 }
 0x115   :  { %139 = vsyncpa [#allocation4], 1 }
 0x116   :  { %140 = vsyncpa [#allocation5], 1 }

</bundles_post_ra>
